<compile_context>
chip_gen: v7x
topology: tpu7x:2x2x1
jax: 0.10.0
libtpu: 0.0.40
codegen_flags: <defaults>
</compile_context>

<pallas_src>
import functools

import jax
import jax.numpy as jnp
from jax.experimental import pallas as pl
from jax.experimental.pallas import tpu as pltpu

_EPS = 1e-08


# --------------------------------------------------------------------------
# Kernel: per-row instance norm + affine.  rows = B*C, reduction over L.
#   x_ref  : (row_tile, L)  native dtype
#   sb_ref : (row_tile, 2)  f32, column 0 = scale, column 1 = bias
#   o_ref  : (row_tile, L)  native dtype
# --------------------------------------------------------------------------
def adain_rows_kernel(x_ref, sb_ref, o_ref, *, length):
    x = x_ref[...].astype(jnp.float32)                          # (T, L)

    # two-pass statistics (tile is VMEM resident, so this is one extra sweep)
    mean = jnp.sum(x, axis=-1, keepdims=True) * (1.0 / length)  # (T, 1)
    centered = x - mean                                          # (T, L)
    var = jnp.sum(centered * centered, axis=-1, keepdims=True) * (1.0 / (length - 1))
    std = jnp.sqrt(var) + _EPS                                   # eps AFTER sqrt (torch.std + eps)

    sb = sb_ref[...]                                             # (T, 2)
    scale = sb[:, 0:1]                                           # (T, 1)
    bias = sb[:, 1:2]                                            # (T, 1)

    # per-element path: one mul + one add (per-row divide folded into `scale/std`)
    o_ref[...] = (centered * (scale / std) + bias).astype(o_ref.dtype)


# --------------------------------------------------------------------------
# Tiling helpers
# --------------------------------------------------------------------------
def _vmem_budgets():
    """(tile byte budget, vmem_limit_bytes) per TPU generation."""
    kind = ""
    try:
        kind = jax.devices()[0].device_kind.lower()
    except Exception:
        pass
    if ("v5" in kind) or ("v6" in kind):
        # 128 MiB physical VMEM: big tiles amortize the ~0.35 us/step overhead.
        return 40 * 1024 * 1024, 80 * 1024 * 1024
    # v7x (64 MiB per TensorCore) or unknown: stay conservative.
    return 22 * 1024 * 1024, 48 * 1024 * 1024


def _pick_row_tile(rows, length, itemsize, tile_budget):
    """Largest multiple-of-16 row tile fitting the budget (double-buffered in+out
    pipeline buffers in the native dtype plus the f32 working set)."""
    per_row_bytes = 4 * length * itemsize + 12 * length
    tile = max(16, (tile_budget // per_row_bytes) // 16 * 16)
    # keep >= 2 grid steps so v7x's two TensorCores both get work (cheap on 1-TC chips)
    if rows >= 32:
        half = (-(-((rows + 1) // 2) // 16)) * 16
        tile = min(tile, max(16, half))
    if tile >= rows:
        return rows                       # single full-extent block (always layout-legal)
    return tile                           # multiple of 16 -> satisfies (8,128)/(16,128) tiling


# --------------------------------------------------------------------------
# Wrapper
# --------------------------------------------------------------------------
def adaptive_instance_norm_1d(x, style, ws, bs, wb, bb):
    """x: (B, C, L) any float dtype; style: (B, S_in).
    ws/wb: (C, S_in) PyTorch Linear weights (scale/bias heads); bs/bb: (C,)."""
    B, C, L = x.shape
    # TODO(synk): L == 1 yields inf/nan (unbiased std divides by L-1), matching torch.std.

    # ---- style projection: tiny matmuls, let XLA fuse them (no pallas_call) ----
    f32 = jnp.float32
    scale = style.astype(f32) @ ws.astype(f32).T + bs.astype(f32)    # (B, C)
    bias = style.astype(f32) @ wb.astype(f32).T + bb.astype(f32)     # (B, C)
    sb = jnp.stack([scale, bias], axis=-1).reshape(B * C, 2)         # (rows, 2) f32

    # ---- streaming row-tiled normalization (native dtype, no pad, no slice) ----
    rows = B * C
    x2d = x.reshape(rows, L)

    tile_budget, vmem_limit = _vmem_budgets()
    row_tile = _pick_row_tile(rows, L, x.dtype.itemsize, tile_budget)
    n_tiles = pl.cdiv(rows, row_tile)

    out2d = pl.pallas_call(
        functools.partial(adain_rows_kernel, length=L),
        out_shape=jax.ShapeDtypeStruct((rows, L), x.dtype),
        grid=(n_tiles,),
        in_specs=[
            pl.BlockSpec((row_tile, L), lambda i: (i, 0)),
            pl.BlockSpec((row_tile, 2), lambda i: (i, 0)),
        ],
        out_specs=pl.BlockSpec((row_tile, L), lambda i: (i, 0)),
        compiler_params=pltpu.CompilerParams(
            dimension_semantics=("parallel",),      # megacore sharding on v7x
            vmem_limit_bytes=vmem_limit,
        ),
    )(x2d, sb)

    return out2d.reshape(B, C, L)


# --------------------------------------------------------------------------
# Pure-JAX reference (two-pass variance, matches the PyTorch module)
# --------------------------------------------------------------------------
def _reference(x, style, ws, bs, wb, bb):
    scale = style @ ws.T + bs
    bias = style @ wb.T + bb
    mean = jnp.mean(x, axis=-1, keepdims=True)
    std = jnp.sqrt(
        jnp.sum((x - mean) ** 2, axis=-1, keepdims=True) / (x.shape[-1] - 1)
    ) + _EPS
    return scale[:, :, None] * (x - mean) / std + bias[:, :, None]


if __name__ == "__main__":
    B, C, L = 2, 4, 16          # batch, channels (= style_out_ch), length
    S_IN = 8                    # style_in_ch

    key = jax.random.PRNGKey(0)
    kx, ks, k1, k2, k3, k4 = jax.random.split(key, 6)

    x = jax.random.normal(kx, (B, C, L), dtype=jnp.float32)
    style = jax.random.normal(ks, (B, S_IN), dtype=jnp.float32)

    bound = 1.0 / (S_IN ** 0.5)
    ws = jax.random.uniform(k1, (C, S_IN), minval=-bound, maxval=bound, dtype=jnp.float32)
    bs = jax.random.uniform(k2, (C,), minval=-bound, maxval=bound, dtype=jnp.float32)
    wb = jax.random.uniform(k3, (C, S_IN), minval=-bound, maxval=bound, dtype=jnp.float32)
    bb = jax.random.uniform(k4, (C,), minval=-bound, maxval=bound, dtype=jnp.float32)

    out = adaptive_instance_norm_1d(x, style, ws, bs, wb, bb)
    out = jax.block_until_ready(out)

    ref = _reference(x, style, ws, bs, wb, bb)
    assert out.shape == (B, C, L)
    assert jnp.allclose(out, ref, atol=2e-5, rtol=2e-5), float(jnp.max(jnp.abs(out - ref)))

    print("KERNEL_OK")
</pallas_src>

<mosaic_0001>
module attributes {stable_mosaic.version = 11 : i64} {
  func.func @adain_rows_kernel(%arg0: i32, %arg1: memref<8x16xf32, #tpu.memory_space<vmem>>, %arg2: memref<8x2xf32, #tpu.memory_space<vmem>>, %arg3: memref<8x16xf32, #tpu.memory_space<vmem>>) attributes {dimension_semantics = [#tpu.dimension_semantics<parallel>], iteration_bounds = array<i64: 1>, scalar_prefetch = 0 : i64, scratch_operands = 0 : i64, tpu.core_type = #tpu.core_type<tc>, window_params = [{transform_indices = @transform_0, window_bounds = array<i64: 8, 16>}, {transform_indices = @transform_1, window_bounds = array<i64: 8, 2>}, {transform_indices = @transform_2, window_bounds = array<i64: 8, 16>}]} {
    %c0 = arith.constant 0 : index
    %c0_0 = arith.constant 0 : index
    %0 = vector.load %arg1[%c0, %c0_0] : memref<8x16xf32, #tpu.memory_space<vmem>>, vector<8x16xf32>
    %cst = arith.constant dense<0.000000e+00> : vector<8xf32>
    %1 = vector.multi_reduction <add>, %0, %cst [1] : vector<8x16xf32> to vector<8xf32>
    %2 = vector.shape_cast %1 : vector<8xf32> to vector<8x1xf32>
    %cst_1 = arith.constant 6.250000e-02 : f32
    %3 = vector.broadcast %cst_1 : f32 to vector<8x1xf32>
    %4 = arith.mulf %2, %3 : vector<8x1xf32>
    %5 = vector.broadcast %4 : vector<8x1xf32> to vector<8x16xf32>
    %6 = arith.subf %0, %5 : vector<8x16xf32>
    %7 = arith.mulf %6, %6 : vector<8x16xf32>
    %cst_2 = arith.constant dense<0.000000e+00> : vector<8xf32>
    %8 = vector.multi_reduction <add>, %7, %cst_2 [1] : vector<8x16xf32> to vector<8xf32>
    %9 = vector.shape_cast %8 : vector<8xf32> to vector<8x1xf32>
    %cst_3 = arith.constant 0.0666666701 : f32
    %10 = vector.broadcast %cst_3 : f32 to vector<8x1xf32>
    %11 = arith.mulf %9, %10 : vector<8x1xf32>
    %12 = math.sqrt %11 : vector<8x1xf32>
    %cst_4 = arith.constant 9.99999993E-9 : f32
    %13 = vector.broadcast %cst_4 : f32 to vector<8x1xf32>
    %14 = arith.addf %12, %13 : vector<8x1xf32>
    %c0_5 = arith.constant 0 : index
    %c0_6 = arith.constant 0 : index
    %15 = vector.load %arg2[%c0_5, %c0_6] : memref<8x2xf32, #tpu.memory_space<vmem>>, vector<8x2xf32>
    %16 = vector.extract_strided_slice %15 {offsets = [0, 0], sizes = [8, 1], strides = [1, 1]} : vector<8x2xf32> to vector<8x1xf32>
    %17 = vector.extract_strided_slice %15 {offsets = [0, 1], sizes = [8, 1], strides = [1, 1]} : vector<8x2xf32> to vector<8x1xf32>
    %18 = arith.divf %16, %14 : vector<8x1xf32>
    %19 = vector.broadcast %18 : vector<8x1xf32> to vector<8x16xf32>
    %20 = arith.mulf %6, %19 : vector<8x16xf32>
    %21 = vector.broadcast %17 : vector<8x1xf32> to vector<8x16xf32>
    %22 = arith.addf %20, %21 : vector<8x16xf32>
    %c0_7 = arith.constant 0 : index
    %c0_8 = arith.constant 0 : index
    %23 = vector.load %arg3[%c0_7, %c0_8] : memref<8x16xf32, #tpu.memory_space<vmem>>, vector<8x16xf32>
    tpu.vector_store %arg3[%c0_7, %c0_8], %22 {strides = array<i32>} : memref<8x16xf32, #tpu.memory_space<vmem>>, vector<8x16xf32>,
    return
  }
  func.func @transform_0(%arg0: i32) -> (i32, i32) {
    %c0_i32 = arith.constant 0 : i32
    %c0_i32_0 = arith.constant 0 : i32
    return %arg0, %c0_i32 : i32, i32
  }
  func.func @transform_1(%arg0: i32) -> (i32, i32) {
    %c0_i32 = arith.constant 0 : i32
    %c0_i32_0 = arith.constant 0 : i32
    return %arg0, %c0_i32 : i32, i32
  }
  func.func @transform_2(%arg0: i32) -> (i32, i32) {
    %c0_i32 = arith.constant 0 : i32
    %c0_i32_0 = arith.constant 0 : i32
    return %arg0, %c0_i32 : i32, i32
  }
}

</mosaic_0001>

<bundles_post_ra>
// kernel: tpu_custom_call.1
= control target key start
LH: loop header
LB: loop body
LE: loop exit
PB: predicated region body
PF: predicated region fallthrough
CT: control target
= control target key end

     0   :  { %vm13_vm0 = vcmask 130048   ;;  %s135_s0 = inlined_call_operand.vmem [shape: f32[8,16], index: 0, kind: input, shape index: {}]   ;;  %s136_s1 = inlined_call_operand.vmem [shape: f32[8,2], index: 1, kind: input, shape index: {}]   ;;  %s137_s2 = inlined_call_operand.hbm [shape: f32[8,16], index: 2, kind: output, shape index: {}]  }
   0x1   :  { %v12_v0 = vld [vmem:[%s135_s0] sm:$0xff] }
   0x2   :  { %7 = vsyncpa [#allocation3], 0  ;;  %v14_v1 = vsel %vm13_vm0, %v12_v0, 0.0  ;;  %v96_v7 = vmov 0   ;;  %v97_v8 = vmov 1   ;;  %v32_v17 = vld [vmem:[%s136_s1] sm:$0xff] }
   0x3   :  { %15 = vadd.xlane.f32.xlu0 %v14_v1  ;;  %65 = vset.pattern.permute.xlu1 %v96_v7  ;;  %s98_s12 = smov [#allocation2]  }
   0x4   :  { %67 = vset.pattern.permute.xlu0 %v97_v8  ;;  %s54_s13 = sshll.u32 %s98_s12, 4  ;;  %s55_s13 = int_to_ptr.vmem [resolvable:$true] %s54_s13 }
   0x5   :  { %s72_s14 = scalar_lea.vmem %s55_s13, 128  ;;  %p77_p1 = scmp.lt.s32.totalorder %s55_s13, %s55_s13 }
   0x6   :  { %p73_p0 = scmp.ne.s32.totalorder %s55_s13, %s72_s14  ;;  %p78_p2 = scmp.lt.s32.totalorder %s72_s14, %s72_s14 }
   0x8   :  { %p79_p3 = por %p78_p2, %p77_p1 }
   0xa   :  { %p80_p4 = pnand %p79_p3, %p73_p0 }
  0x90   :  { %v16_v2 = vpop.xlane.xlu0 %15 }
  0x91   :  { %v17_v3 = vmul.f32 0.0625, %v16_v2 }
  0x93   :  { %v18_v4 = vsub.f32 %v12_v0, %v17_v3 }
  0x95   :  { %v19_v5 = vmul.f32 %v18_v4, %v18_v4 }
  0x97   :  { %v20_v6 = vsel %vm13_vm0, %v19_v5, 0.0 }
  0x98   :  { %21 = vadd.xlane.f32.xlu0 %v20_v6 }
 0x125   :  { %v22_v9 = vpop.xlane.xlu0 %21 }
 0x126   :  { %v23_v10 = vmul.f32 0.06666667, %v22_v9 }
 0x128   :  { %68 = vrsqrt.f32 %v23_v10  ;;  %vm26_vm1 = vcmp.eq.f32.partialorder %v23_v10, inf  ;;  %v29_v13 = vand.u32 2147483648, %v23_v10  ;;  %vm28_vm2 = vcmp.eq.f32.partialorder %v23_v10, 0.0 }
 0x132   :  { %v69_v11 = vpop.eup %68 }
 0x133   :  { %v25_v12 = vmul.f32 %v69_v11, %v23_v10 }
 0x135   :  { %v27_v14 = vsel %vm26_vm1, %v23_v10, %v25_v12 }
 0x136   :  { %v30_v15 = vsel %vm28_vm2, %v29_v13, %v27_v14 }
 0x137   :  { %v31_v16 = vadd.f32 1e-08, %v30_v15 }
 0x139   :  { %70 = vrcp.f32 %v31_v16 }
 0x143   :  { %v71_v18 = vpop.eup %70 }
 0x144   :  { %v34_v19 = vmul.f32 %v71_v18, %v32_v17 }
 0x146   :  { %37 = vperm.xlu1 %65, %v34_v19  }
 0x14a   :  { %66 = vset.pattern.permute.xlu1 %v97_v8 }
 0x14b   :  { %43 = vperm.xlu1 %66, %v32_v17  }
 0x1c5   :  { %v38_v20 = vpop.permute.xlu1 %37 }
 0x1c6   :  { %v40_v21 = vmul.f32 %v38_v20, %v18_v4 }
 0x1ca   :  { %v44_v22 = vpop.permute.xlu1 %43 }
 0x1cb   :  { %v46_v23 = vadd.f32 %v44_v22, %v40_v21 }
 0x1cd   :  { %47 = vst.msk [vmem:[#allocation2] sm:$0xff] %vm13_vm0, %v46_v23 }
 0x1ce   :  { %83 = shalt.err (!%p80_p4)
}
 0x1cf   :  { %s84_s16 = scalar_lea.hbm %s137_s2, 128 }
 0x1d0   :  { %p85_p5 = scmp.ne.s32.totalorder %s137_s2, %s84_s16  ;;  %p88_p6 = scmp.lt.u32.totalorder %s84_s16, %s137_s2 }
 0x1d2   :  { %p90_p7 = pnand %p88_p6, %p85_p5 }
 0x1d4   :  { %93 = shalt.err (!%p90_p7)
}
 0x1d5   :  { %57 = dma.vmem_to_hbm [thread:$0]  %s55_s13, 128, %s137_s2, [#allocation3]  }
 0x1d6   :  { %94 = dma.done.wait [#allocation3], 128  }
 0x1d7   :  { %95 = vsyncadd [#allocation3], 4294967168 }
 0x1d8   :  { %61 = vsyncpa [#allocation3], 1 }

</bundles_post_ra>
